<compile_context>
chip_gen: v6e
topology: v6e:2x2x1
jax: 0.10.0
libtpu: 0.0.40
codegen_flags: <defaults>
</compile_context>

<pallas_src>
import functools

import jax
import jax.numpy as jnp
from jax.experimental import pallas as pl
from jax.experimental.pallas import tpu as pltpu


def _round_up(x, m):
    return ((x + m - 1) // m) * m


# ----------------------------------------------------------------------------
# The fused whole-network kernel.
# grid = (batch_blocks, layers_num); activations + residual stay in VMEM
# across the (sequential, "arbitrary") layer axis, per-layer weights are
# streamed (double-buffered) by the BlockSpec pipeline.
# ----------------------------------------------------------------------------
def _gatedcnn_kernel(emb_ref, w_ref, b_ref, o_ref, xpad, res, *,
                     bb, lpad, zpad, kernel_size, block_size, approx_sigmoid):
    # emb_ref : (BB, Lp, C)        channel-padded embeddings (compute dtype)
    # w_ref   : (1, K, C, 2Hp)     fused [conv|gate] weight of layer l
    # b_ref   : (1, 1, 2Hp) f32    fused [conv|gate] bias of layer l
    # o_ref   : (BB, Lp, Hp)       final hidden (written only at the last layer)
    # xpad    : (BB*S, C)  VMEM    flat causally padded activations,
    #                              per-sequence layout [Z zeros | Lp rows]
    # res     : (BB, Lp, Hp) f32   residual carry
    l = pl.program_id(1)
    n_layers = pl.num_programs(1)
    K = kernel_size
    S = zpad + lpad                    # per-sequence stride inside xpad
    Hp = o_ref.shape[2]
    M = bb * S - zpad                  # rows of the fused big-M matmuls

    # ---- layer 0: zero the pad/separator rows once, stage the embeddings. --
    @pl.when(l == 0)
    def _init():
        xpad[...] = jnp.zeros(xpad.shape, xpad.dtype)
        for s in range(bb):
            xpad[pl.ds(s * S + zpad, lpad), :] = emb_ref[s].astype(xpad.dtype)

    # ---- K causal taps = K back-to-back MXU matmuls over all BB sequences. -
    # acc[r] is the causal window ending at xpad row (zpad + r).
    acc = jnp.dot(xpad[pl.ds(zpad - (K - 1), M), :], w_ref[0, 0],
                  preferred_element_type=jnp.float32)
    for j in range(1, K):
        acc = acc + jnp.dot(xpad[pl.ds(zpad - (K - 1) + j, M), :], w_ref[0, j],
                            preferred_element_type=jnp.float32)
    acc = acc + b_ref[0]               # fused [conv|gate] bias, epilogue add

    conv, gate = acc[:, :Hp], acc[:, Hp:]
    if approx_sigmoid:
        sig = pl.reciprocal(1.0 + jnp.exp(-gate), approx=True)   # EUP only
    else:
        sig = 1.0 / (1.0 + jnp.exp(-gate))
    h = conv * sig                     # (M, Hp) float32

    # ---- per-sequence epilogue: residual, restage next layer, final output. -
    use_res = jnp.logical_and(l > 0, l % block_size == 0)
    for s in range(bb):                # static unroll; bb is kept small
        hs = h[s * S:s * S + lpad, :]  # sublane-aligned (Lp, Hp) value slice
        hs = jnp.where(use_res, hs + res[s], hs)

        @pl.when(jnp.logical_or(l == 0, use_res))
        def _update_res(hs=hs, s=s):
            res[s] = hs

        # Restage the next layer's input; the Z separator rows stay zero so no
        # per-layer re-padding is needed.
        xpad[pl.ds(s * S + zpad, lpad), pl.ds(0, Hp)] = hs.astype(xpad.dtype)

        @pl.when(l == n_layers - 1)    # write the output block exactly once
        def _write_out(hs=hs, s=s):
            o_ref[s] = hs.astype(o_ref.dtype)


# ----------------------------------------------------------------------------
# Parameter fusion + lane padding: [conv|gate] concatenated on the output dim,
# layers stacked, Cin padded to C and Cout padded to Hp (zeros).
# ----------------------------------------------------------------------------
def _fuse_and_pad_params(params, layers_num, cin_pad, hidden_pad, compute_dtype):
    def pad_w(w):   # (K, cin, cout) -> (K, cin_pad, hidden_pad)
        return jnp.pad(w, ((0, 0), (0, cin_pad - w.shape[1]),
                           (0, hidden_pad - w.shape[2])))

    def pad_b(b):   # (1, cout) -> (1, hidden_pad)
        return jnp.pad(b, ((0, 0), (0, hidden_pad - b.shape[1])))

    w_layers = [jnp.concatenate([pad_w(params["w_conv1"]),
                                 pad_w(params["w_gate1"])], axis=-1)]
    b_layers = [jnp.concatenate([pad_b(params["b_conv1"]),
                                 pad_b(params["b_gate1"])], axis=-1)]
    for i in range(layers_num - 1):
        w_layers.append(jnp.concatenate([pad_w(params["w_conv"][i]),
                                         pad_w(params["w_gate"][i])], axis=-1))
        b_layers.append(jnp.concatenate([pad_b(params["b_conv"][i]),
                                         pad_b(params["b_gate"][i])], axis=-1))
    w_all = jnp.stack(w_layers).astype(compute_dtype)   # (NL, K, C, 2Hp)
    b_all = jnp.stack(b_layers).astype(jnp.float32)     # (NL, 1, 2Hp)
    return w_all, b_all


# ----------------------------------------------------------------------------
# Full encoder wrapper.
# ----------------------------------------------------------------------------
def gatedcnn_encoder(emb, seg, params, *, kernel_size, block_size, layers_num,
                     compute_dtype=jnp.float32, batch_block=None,
                     vmem_budget_bytes=48 * 1024 * 1024,
                     approx_sigmoid=False):
    """[B, L, E] embeddings -> [B, L, H] GatedCNN encoding (causal gated conv)."""
    del seg  # unused by the reference forward pass as well
    B, L, E = emb.shape
    H = params["w_conv1"].shape[-1]
    K = kernel_size

    Hp = _round_up(H, 128)              # lane-aligned hidden width
    C = max(_round_up(E, 128), Hp)      # xpad / weight Cin width
    Lp = _round_up(L, 8)                # sublane-aligned sequence length
    Z = _round_up(K - 1, 8)             # zero separator rows (>= causal pad)
    S = Z + Lp                          # per-sequence stride in the flat buffer
    itemsize = jnp.dtype(compute_dtype).itemsize

    def vmem_estimate(bb_):
        w_blk = 2 * K * C * 2 * Hp * itemsize          # double-buffered weights
        io_blk = 2 * bb_ * Lp * (C + Hp) * itemsize    # emb + out blocks
        xpad_b = bb_ * S * C * itemsize                # flat activation buffer
        res_b = bb_ * Lp * Hp * 4                      # f32 residual carry
        tmp_b = bb_ * S * 3 * Hp * 4                   # f32 acc + gated value
        return w_blk + io_blk + xpad_b + res_b + tmp_b

    if batch_block is None:
        # Maximise weight reuse while (a) keeping >= 2 batch blocks so both
        # v7x TensorCores get work, (b) bounding the static per-sequence
        # unroll, (c) fitting the VMEM budget.
        bb = min(max(1, -(-B // 2)), 8)
        while bb > 1 and vmem_estimate(bb) > vmem_budget_bytes:
            bb = -(-bb // 2)
    else:
        bb = batch_block
    n_bb = -(-B // bb)
    Bp = n_bb * bb

    w_all, b_all = _fuse_and_pad_params(params, layers_num, C, Hp, compute_dtype)
    emb_p = jnp.pad(emb, ((0, Bp - B), (0, Lp - L),
                          (0, C - E))).astype(compute_dtype)

    kernel = functools.partial(
        _gatedcnn_kernel, bb=bb, lpad=Lp, zpad=Z, kernel_size=K,
        block_size=block_size, approx_sigmoid=approx_sigmoid)

    out = pl.pallas_call(
        kernel,
        out_shape=jax.ShapeDtypeStruct((Bp, Lp, Hp), compute_dtype),
        grid=(n_bb, layers_num),
        in_specs=[
            pl.BlockSpec((bb, Lp, C), lambda b, l: (b, 0, 0)),
            pl.BlockSpec((1, K, C, 2 * Hp), lambda b, l: (l, 0, 0, 0)),
            pl.BlockSpec((1, 1, 2 * Hp), lambda b, l: (l, 0, 0)),
        ],
        out_specs=pl.BlockSpec((bb, Lp, Hp), lambda b, l: (b, 0, 0)),
        scratch_shapes=[
            pltpu.VMEM((bb * S, C), compute_dtype),      # flat padded hidden
            pltpu.VMEM((bb, Lp, Hp), jnp.float32),       # residual carry (f32)
        ],
        compiler_params=pltpu.CompilerParams(
            dimension_semantics=("parallel", "arbitrary"),
            vmem_limit_bytes=int(max(vmem_budget_bytes, vmem_estimate(bb)))),
    )(emb_p, w_all, b_all)

    return out[:B, :L, :H]


# ----------------------------------------------------------------------------
# Pure-JAX reference (same math, unfused / unpadded weights).
# ----------------------------------------------------------------------------
def _ref_layer(x_padded, w_conv, w_gate, b_conv, b_gate, L):
    K = w_conv.shape[0]
    B = x_padded.shape[0]
    H = w_conv.shape[-1]
    acc_c = jnp.broadcast_to(b_conv, (B, L, H))
    acc_g = jnp.broadcast_to(b_gate, (B, L, H))
    for j in range(K):
        xs = x_padded[:, j:j + L, :]
        acc_c = acc_c + jnp.einsum("blc,ch->blh", xs, w_conv[j])
        acc_g = acc_g + jnp.einsum("blc,ch->blh", xs, w_gate[j])
    return acc_c * jax.nn.sigmoid(acc_g)


def _ref_encoder(emb, params, kernel_size, block_size, layers_num):
    B, L, E = emb.shape
    H = params["w_conv1"].shape[-1]
    x = jnp.concatenate([jnp.zeros((B, kernel_size - 1, E)), emb], axis=1)
    hidden = _ref_layer(x, params["w_conv1"], params["w_gate1"],
                        params["b_conv1"], params["b_gate1"], L)
    res_input = hidden
    pad_h = jnp.zeros((B, kernel_size - 1, H))
    for i in range(layers_num - 1):
        x = jnp.concatenate([pad_h, hidden], axis=1)
        hidden = _ref_layer(x, params["w_conv"][i], params["w_gate"][i],
                            params["b_conv"][i], params["b_gate"][i], L)
        if (i + 1) % block_size == 0:
            hidden = hidden + res_input
            res_input = hidden
    return hidden


# ----------------------------------------------------------------------------
# Deterministic parameter construction (shapes per the PyTorch __init__).
# ----------------------------------------------------------------------------
def init_params(key, *, emb_size, hidden_size, kernel_size, layers_num):
    keys = jax.random.split(key, 8 + 6 * max(layers_num - 1, 0))
    k_it = iter(keys)
    std = 0.05

    def rnd(shape):
        return std * jax.random.normal(next(k_it), shape, dtype=jnp.float32)

    # conv_1 / gate_1 : PyTorch weight [H, 1, k, E] -> per-tap matmul [k, E, H]
    w_conv1_pt = rnd((hidden_size, 1, kernel_size, emb_size))
    w_gate1_pt = rnd((hidden_size, 1, kernel_size, emb_size))
    w_conv1 = jnp.transpose(w_conv1_pt[:, 0], (1, 2, 0))  # (k, E, H)
    w_gate1 = jnp.transpose(w_gate1_pt[:, 0], (1, 2, 0))
    # conv bias [H] + extra parameter conv_b1 [1,H,1,1] -> fused bias (1, H)
    b_conv1 = (rnd((hidden_size,)) + rnd((hidden_size,)))[None, :]
    b_gate1 = (rnd((hidden_size,)) + rnd((hidden_size,)))[None, :]

    w_conv, w_gate, b_conv, b_gate = [], [], [], []
    for _ in range(layers_num - 1):
        # PyTorch weight [H, H, k, 1] -> [k, Cin=H, H]
        wc_pt = rnd((hidden_size, hidden_size, kernel_size, 1))
        wg_pt = rnd((hidden_size, hidden_size, kernel_size, 1))
        w_conv.append(jnp.transpose(wc_pt[:, :, :, 0], (2, 1, 0)))
        w_gate.append(jnp.transpose(wg_pt[:, :, :, 0], (2, 1, 0)))
        b_conv.append((rnd((hidden_size,)) + rnd((hidden_size,)))[None, :])
        b_gate.append((rnd((hidden_size,)) + rnd((hidden_size,)))[None, :])

    return {
        "w_conv1": w_conv1, "w_gate1": w_gate1,
        "b_conv1": b_conv1, "b_gate1": b_gate1,
        "w_conv": w_conv, "w_gate": w_gate,
        "b_conv": b_conv, "b_gate": b_gate,
    }


if __name__ == "__main__":
    # Small config: batch=3 (exercises batch padding), seq=8, emb=32, hidden=32,
    # kernel=3, 3 layers, residual every 2 layers.  The auto heuristic picks
    # BB=2 -> 2 batch blocks of 2 sequences each (one zero-padded).
    B, L, E, H, K = 3, 8, 32, 32, 3
    LAYERS, BLOCK = 3, 2

    key = jax.random.PRNGKey(0)
    k_emb, k_params = jax.random.split(key)
    emb = jax.random.normal(k_emb, (B, L, E), dtype=jnp.float32)
    seg = jnp.ones((B, L), dtype=jnp.int32)  # unused, mirrors the torch API

    params = init_params(k_params, emb_size=E, hidden_size=H,
                         kernel_size=K, layers_num=LAYERS)
    ref = _ref_encoder(emb, params, K, BLOCK, LAYERS)

    # f32 run (tight check against the pure-JAX reference).
    fwd = jax.jit(functools.partial(gatedcnn_encoder, kernel_size=K,
                                    block_size=BLOCK, layers_num=LAYERS))
    out = jax.block_until_ready(fwd(emb, seg, params))
    assert out.shape == (B, L, H), out.shape
    assert jnp.allclose(out, ref, atol=1e-4, rtol=1e-4), (
        float(jnp.max(jnp.abs(out - ref))))

    # layers_num == 1 edge case (single gated layer, no residual stack).
    params1 = init_params(k_params, emb_size=E, hidden_size=H,
                          kernel_size=K, layers_num=1)
    fwd1 = jax.jit(functools.partial(gatedcnn_encoder, kernel_size=K,
                                     block_size=BLOCK, layers_num=1))
    out1 = jax.block_until_ready(fwd1(emb, seg, params1))
    ref1 = _ref_encoder(emb, params1, K, BLOCK, 1)
    assert jnp.allclose(out1, ref1, atol=1e-4, rtol=1e-4), (
        float(jnp.max(jnp.abs(out1 - ref1))))

    # bf16 activations/weights (f32 accumulation, gating, residual) with the
    # EUP approx-reciprocal sigmoid; loose check.
    fwd_bf16 = jax.jit(functools.partial(
        gatedcnn_encoder, kernel_size=K, block_size=BLOCK, layers_num=LAYERS,
        compute_dtype=jnp.bfloat16, approx_sigmoid=True))
    out_bf16 = jax.block_until_ready(fwd_bf16(emb, seg, params))
    assert out_bf16.shape == (B, L, H), out_bf16.shape
    assert jnp.allclose(out_bf16.astype(jnp.float32), ref,
                        atol=1e-1, rtol=1e-1), (
        float(jnp.max(jnp.abs(out_bf16.astype(jnp.float32) - ref))))

    print("KERNEL_OK")
</pallas_src>

<mosaic_0001>
module attributes {stable_mosaic.version = 11 : i64} {
  func.func @_gatedcnn_kernel(%arg0: i32, %arg1: i32, %arg2: memref<2x8x128xf32, #tpu.memory_space<vmem>>, %arg3: memref<1x3x128x256xf32, #tpu.memory_space<vmem>>, %arg4: memref<1x1x256xf32, #tpu.memory_space<vmem>>, %arg5: memref<2x8x128xf32, #tpu.memory_space<vmem>>, %arg6: memref<32x128xf32, #tpu.memory_space<vmem>>, %arg7: memref<2x8x128xf32, #tpu.memory_space<vmem>>) attributes {dimension_semantics = [#tpu.dimension_semantics<parallel>, #tpu.dimension_semantics<arbitrary>], iteration_bounds = array<i64: 2, 3>, scalar_prefetch = 0 : i64, scratch_operands = 2 : i64, tpu.core_type = #tpu.core_type<tc>, window_params = [{transform_indices = @transform_0, window_bounds = array<i64: 2, 8, 128>}, {transform_indices = @transform_1, window_bounds = array<i64: 1, 3, 128, 256>}, {transform_indices = @transform_2, window_bounds = array<i64: 1, 1, 256>}, {transform_indices = @transform_3, window_bounds = array<i64: 2, 8, 128>}]} {
    %c0_i32 = arith.constant 0 : i32
    %0 = arith.cmpi eq, %arg1, %c0_i32 : i32
    %1 = arith.extui %0 : i1 to i32
    %c0_i32_0 = arith.constant 0 : i32
    %2 = arith.cmpi ne, %1, %c0_i32_0 : i32
    scf.if %2 {
      %cst_44 = arith.constant 0.000000e+00 : f32
      %70 = vector.broadcast %cst_44 : f32 to vector<32x128xf32>
      %c0_45 = arith.constant 0 : index
      %c0_46 = arith.constant 0 : index
      %71 = vector.load %arg6[%c0_45, %c0_46] : memref<32x128xf32, #tpu.memory_space<vmem>>, vector<32x128xf32>
      tpu.vector_store %arg6[%c0_45, %c0_46], %70 {strides = array<i32>} : memref<32x128xf32, #tpu.memory_space<vmem>>, vector<32x128xf32>,
      %c0_47 = arith.constant 0 : index
      %c0_48 = arith.constant 0 : index
      %c0_49 = arith.constant 0 : index
      %72 = vector.load %arg2[%c0_47, %c0_48, %c0_49] : memref<2x8x128xf32, #tpu.memory_space<vmem>>, vector<1x8x128xf32>
      %73 = vector.shape_cast %72 : vector<1x8x128xf32> to vector<8x128xf32>
      %c8_50 = arith.constant 8 : index
      %c0_51 = arith.constant 0 : index
      %74 = vector.load %arg6[%c8_50, %c0_51] : memref<32x128xf32, #tpu.memory_space<vmem>>, vector<8x128xf32>
      tpu.vector_store %arg6[%c8_50, %c0_51], %73 {strides = array<i32>} : memref<32x128xf32, #tpu.memory_space<vmem>>, vector<8x128xf32>,
      %c1_52 = arith.constant 1 : index
      %c0_53 = arith.constant 0 : index
      %c0_54 = arith.constant 0 : index
      %75 = vector.load %arg2[%c1_52, %c0_53, %c0_54] : memref<2x8x128xf32, #tpu.memory_space<vmem>>, vector<1x8x128xf32>
      %76 = vector.shape_cast %75 : vector<1x8x128xf32> to vector<8x128xf32>
      %c24_55 = arith.constant 24 : index
      %c0_56 = arith.constant 0 : index
      %77 = vector.load %arg6[%c24_55, %c0_56] : memref<32x128xf32, #tpu.memory_space<vmem>>, vector<8x128xf32>
      tpu.vector_store %arg6[%c24_55, %c0_56], %76 {strides = array<i32>} : memref<32x128xf32, #tpu.memory_space<vmem>>, vector<8x128xf32>,
    } else {
    }
    %c6 = arith.constant 6 : index
    %c0 = arith.constant 0 : index
    %3 = vector.load %arg6[%c6, %c0] : memref<32x128xf32, #tpu.memory_space<vmem>>, vector<24x128xf32>
    %c0_1 = arith.constant 0 : index
    %c0_2 = arith.constant 0 : index
    %c0_3 = arith.constant 0 : index
    %c0_4 = arith.constant 0 : index
    %4 = vector.load %arg3[%c0_1, %c0_2, %c0_3, %c0_4] : memref<1x3x128x256xf32, #tpu.memory_space<vmem>>, vector<1x1x128x256xf32>
    %5 = vector.shape_cast %4 : vector<1x1x128x256xf32> to vector<128x256xf32>
    %cst = arith.constant dense<0.000000e+00> : vector<24x256xf32>
    %6 = tpu.matmul %3, %5, %cst {dimension_numbers = #tpu.dot_dimension_numbers<[1], [0], [0], [1], [0, 0, 1, 1], [], []>} : vector<24x128xf32>, vector<128x256xf32>, vector<24x256xf32> -> vector<24x256xf32>
    %c7 = arith.constant 7 : index
    %c0_5 = arith.constant 0 : index
    %7 = vector.load %arg6[%c7, %c0_5] : memref<32x128xf32, #tpu.memory_space<vmem>>, vector<24x128xf32>
    %c0_6 = arith.constant 0 : index
    %c1 = arith.constant 1 : index
    %c0_7 = arith.constant 0 : index
    %c0_8 = arith.constant 0 : index
    %8 = vector.load %arg3[%c0_6, %c1, %c0_7, %c0_8] : memref<1x3x128x256xf32, #tpu.memory_space<vmem>>, vector<1x1x128x256xf32>
    %9 = vector.shape_cast %8 : vector<1x1x128x256xf32> to vector<128x256xf32>
    %cst_9 = arith.constant dense<0.000000e+00> : vector<24x256xf32>
    %10 = tpu.matmul %7, %9, %cst_9 {dimension_numbers = #tpu.dot_dimension_numbers<[1], [0], [0], [1], [0, 0, 1, 1], [], []>} : vector<24x128xf32>, vector<128x256xf32>, vector<24x256xf32> -> vector<24x256xf32>
    %11 = arith.addf %6, %10 : vector<24x256xf32>
    %c8 = arith.constant 8 : index
    %c0_10 = arith.constant 0 : index
    %12 = vector.load %arg6[%c8, %c0_10] : memref<32x128xf32, #tpu.memory_space<vmem>>, vector<24x128xf32>
    %c0_11 = arith.constant 0 : index
    %c2 = arith.constant 2 : index
    %c0_12 = arith.constant 0 : index
    %c0_13 = arith.constant 0 : index
    %13 = vector.load %arg3[%c0_11, %c2, %c0_12, %c0_13] : memref<1x3x128x256xf32, #tpu.memory_space<vmem>>, vector<1x1x128x256xf32>
    %14 = vector.shape_cast %13 : vector<1x1x128x256xf32> to vector<128x256xf32>
    %cst_14 = arith.constant dense<0.000000e+00> : vector<24x256xf32>
    %15 = tpu.matmul %12, %14, %cst_14 {dimension_numbers = #tpu.dot_dimension_numbers<[1], [0], [0], [1], [0, 0, 1, 1], [], []>} : vector<24x128xf32>, vector<128x256xf32>, vector<24x256xf32> -> vector<24x256xf32>
    %16 = arith.addf %11, %15 : vector<24x256xf32>
    %c0_15 = arith.constant 0 : index
    %c0_16 = arith.constant 0 : index
    %c0_17 = arith.constant 0 : index
    %17 = vector.load %arg4[%c0_15, %c0_16, %c0_17] : memref<1x1x256xf32, #tpu.memory_space<vmem>>, vector<1x1x256xf32>
    %18 = vector.shape_cast %17 : vector<1x1x256xf32> to vector<1x256xf32>
    %19 = vector.broadcast %18 : vector<1x256xf32> to vector<24x256xf32>
    %20 = arith.addf %16, %19 : vector<24x256xf32>
    %21 = vector.extract_strided_slice %20 {offsets = [0, 0], sizes = [24, 128], strides = [1, 1]} : vector<24x256xf32> to vector<24x128xf32>
    %22 = vector.extract_strided_slice %20 {offsets = [0, 128], sizes = [24, 128], strides = [1, 1]} : vector<24x256xf32> to vector<24x128xf32>
    %cst_18 = arith.constant 0.000000e+00 : f32
    %23 = vector.broadcast %cst_18 : f32 to vector<24x128xf32>
    %24 = arith.subf %23, %22 : vector<24x128xf32>
    %25 = math.exp %24 : vector<24x128xf32>
    %cst_19 = arith.constant 1.000000e+00 : f32
    %26 = vector.broadcast %cst_19 : f32 to vector<24x128xf32>
    %27 = arith.addf %26, %25 : vector<24x128xf32>
    %cst_20 = arith.constant 1.000000e+00 : f32
    %28 = vector.broadcast %cst_20 : f32 to vector<24x128xf32>
    %29 = arith.divf %28, %27 : vector<24x128xf32>
    %30 = arith.mulf %21, %29 : vector<24x128xf32>
    %c0_i32_21 = arith.constant 0 : i32
    %31 = arith.cmpi sgt, %arg1, %c0_i32_21 : i32
    %c2_i32 = arith.constant 2 : i32
    %c0_i32_22 = arith.constant 0 : i32
    %32 = arith.cmpi eq, %c2_i32, %c0_i32_22 : i32
    %c1_i32 = arith.constant 1 : i32
    %33 = arith.select %32, %c1_i32, %c2_i32 : i32
    %34 = arith.remsi %arg1, %33 : i32
    %c0_i32_23 = arith.constant 0 : i32
    %35 = arith.cmpi ne, %34, %c0_i32_23 : i32
    %c0_i32_24 = arith.constant 0 : i32
    %36 = arith.cmpi slt, %34, %c0_i32_24 : i32
    %c0_i32_25 = arith.constant 0 : i32
    %37 = arith.cmpi slt, %33, %c0_i32_25 : i32
    %38 = arith.xori %36, %37 : i1
    %39 = arith.andi %38, %35 : i1
    %40 = arith.addi %34, %33 : i32
    %41 = arith.select %39, %40, %34 : i32
    %c0_i32_26 = arith.constant 0 : i32
    %42 = arith.cmpi eq, %41, %c0_i32_26 : i32
    %43 = arith.andi %31, %42 : i1
    %44 = vector.extract_strided_slice %30 {offsets = [0, 0], sizes = [8, 128], strides = [1, 1]} : vector<24x128xf32> to vector<8x128xf32>
    %c0_27 = arith.constant 0 : index
    %c0_28 = arith.constant 0 : index
    %c0_29 = arith.constant 0 : index
    %45 = vector.load %arg7[%c0_27, %c0_28, %c0_29] : memref<2x8x128xf32, #tpu.memory_space<vmem>>, vector<1x8x128xf32>
    %46 = vector.shape_cast %45 : vector<1x8x128xf32> to vector<8x128xf32>
    %47 = arith.addf %44, %46 : vector<8x128xf32>
    %48 = arith.select %43, %47, %44 : vector<8x128xf32>
    %c0_i32_30 = arith.constant 0 : i32
    %49 = arith.cmpi eq, %arg1, %c0_i32_30 : i32
    %50 = arith.ori %49, %43 : i1
    %51 = arith.extui %50 : i1 to i32
    %c0_i32_31 = arith.constant 0 : i32
    %52 = arith.cmpi ne, %51, %c0_i32_31 : i32
    scf.if %52 {
      %c0_44 = arith.constant 0 : index
      %c0_45 = arith.constant 0 : index
      %c0_46 = arith.constant 0 : index
      %70 = vector.load %arg7[%c0_44, %c0_45, %c0_46] : memref<2x8x128xf32, #tpu.memory_space<vmem>>, vector<1x8x128xf32>
      %71 = vector.shape_cast %70 : vector<1x8x128xf32> to vector<8x128xf32>
      %72 = vector.shape_cast %48 : vector<8x128xf32> to vector<1x8x128xf32>
      tpu.vector_store %arg7[%c0_44, %c0_45, %c0_46], %72 {strides = array<i32>} : memref<2x8x128xf32, #tpu.memory_space<vmem>>, vector<1x8x128xf32>,
    } else {
    }
    %c8_32 = arith.constant 8 : index
    %c0_33 = arith.constant 0 : index
    %53 = vector.load %arg6[%c8_32, %c0_33] : memref<32x128xf32, #tpu.memory_space<vmem>>, vector<8x128xf32>
    tpu.vector_store %arg6[%c8_32, %c0_33], %48 {strides = array<i32>} : memref<32x128xf32, #tpu.memory_space<vmem>>, vector<8x128xf32>,
    %c2_i32_34 = arith.constant 2 : i32
    %54 = arith.cmpi eq, %arg1, %c2_i32_34 : i32
    %55 = arith.extui %54 : i1 to i32
    %c0_i32_35 = arith.constant 0 : i32
    %56 = arith.cmpi ne, %55, %c0_i32_35 : i32
    scf.if %56 {
      %c0_44 = arith.constant 0 : index
      %c0_45 = arith.constant 0 : index
      %c0_46 = arith.constant 0 : index
      %70 = vector.load %arg5[%c0_44, %c0_45, %c0_46] : memref<2x8x128xf32, #tpu.memory_space<vmem>>, vector<1x8x128xf32>
      %71 = vector.shape_cast %70 : vector<1x8x128xf32> to vector<8x128xf32>
      %72 = vector.shape_cast %48 : vector<8x128xf32> to vector<1x8x128xf32>
      tpu.vector_store %arg5[%c0_44, %c0_45, %c0_46], %72 {strides = array<i32>} : memref<2x8x128xf32, #tpu.memory_space<vmem>>, vector<1x8x128xf32>,
    } else {
    }
    %57 = vector.extract_strided_slice %30 {offsets = [16, 0], sizes = [8, 128], strides = [1, 1]} : vector<24x128xf32> to vector<8x128xf32>
    %c1_36 = arith.constant 1 : index
    %c0_37 = arith.constant 0 : index
    %c0_38 = arith.constant 0 : index
    %58 = vector.load %arg7[%c1_36, %c0_37, %c0_38] : memref<2x8x128xf32, #tpu.memory_space<vmem>>, vector<1x8x128xf32>
    %59 = vector.shape_cast %58 : vector<1x8x128xf32> to vector<8x128xf32>
    %60 = arith.addf %57, %59 : vector<8x128xf32>
    %61 = arith.select %43, %60, %57 : vector<8x128xf32>
    %c0_i32_39 = arith.constant 0 : i32
    %62 = arith.cmpi eq, %arg1, %c0_i32_39 : i32
    %63 = arith.ori %62, %43 : i1
    %64 = arith.extui %63 : i1 to i32
    %c0_i32_40 = arith.constant 0 : i32
    %65 = arith.cmpi ne, %64, %c0_i32_40 : i32
    scf.if %65 {
      %c1_44 = arith.constant 1 : index
      %c0_45 = arith.constant 0 : index
      %c0_46 = arith.constant 0 : index
      %70 = vector.load %arg7[%c1_44, %c0_45, %c0_46] : memref<2x8x128xf32, #tpu.memory_space<vmem>>, vector<1x8x128xf32>
      %71 = vector.shape_cast %70 : vector<1x8x128xf32> to vector<8x128xf32>
      %72 = vector.shape_cast %61 : vector<8x128xf32> to vector<1x8x128xf32>
      tpu.vector_store %arg7[%c1_44, %c0_45, %c0_46], %72 {strides = array<i32>} : memref<2x8x128xf32, #tpu.memory_space<vmem>>, vector<1x8x128xf32>,
    } else {
    }
    %c24 = arith.constant 24 : index
    %c0_41 = arith.constant 0 : index
    %66 = vector.load %arg6[%c24, %c0_41] : memref<32x128xf32, #tpu.memory_space<vmem>>, vector<8x128xf32>
    tpu.vector_store %arg6[%c24, %c0_41], %61 {strides = array<i32>} : memref<32x128xf32, #tpu.memory_space<vmem>>, vector<8x128xf32>,
    %c2_i32_42 = arith.constant 2 : i32
    %67 = arith.cmpi eq, %arg1, %c2_i32_42 : i32
    %68 = arith.extui %67 : i1 to i32
    %c0_i32_43 = arith.constant 0 : i32
    %69 = arith.cmpi ne, %68, %c0_i32_43 : i32
    scf.if %69 {
      %c1_44 = arith.constant 1 : index
      %c0_45 = arith.constant 0 : index
      %c0_46 = arith.constant 0 : index
      %70 = vector.load %arg5[%c1_44, %c0_45, %c0_46] : memref<2x8x128xf32, #tpu.memory_space<vmem>>, vector<1x8x128xf32>
      %71 = vector.shape_cast %70 : vector<1x8x128xf32> to vector<8x128xf32>
      %72 = vector.shape_cast %61 : vector<8x128xf32> to vector<1x8x128xf32>
      tpu.vector_store %arg5[%c1_44, %c0_45, %c0_46], %72 {strides = array<i32>} : memref<2x8x128xf32, #tpu.memory_space<vmem>>, vector<1x8x128xf32>,
    } else {
    }
    return
  }
  func.func @transform_0(%arg0: i32, %arg1: i32) -> (i32, i32, i32) {
    %c0_i32 = arith.constant 0 : i32
    %c0_i32_0 = arith.constant 0 : i32
    %c0_i32_1 = arith.constant 0 : i32
    return %arg0, %c0_i32, %c0_i32_0 : i32, i32, i32
  }
  func.func @transform_1(%arg0: i32, %arg1: i32) -> (i32, i32, i32, i32) {
    %c0_i32 = arith.constant 0 : i32
    %c0_i32_0 = arith.constant 0 : i32
    %c0_i32_1 = arith.constant 0 : i32
    %c0_i32_2 = arith.constant 0 : i32
    return %arg1, %c0_i32, %c0_i32_0, %c0_i32_1 : i32, i32, i32, i32
  }
  func.func @transform_2(%arg0: i32, %arg1: i32) -> (i32, i32, i32) {
    %c0_i32 = arith.constant 0 : i32
    %c0_i32_0 = arith.constant 0 : i32
    %c0_i32_1 = arith.constant 0 : i32
    return %arg1, %c0_i32, %c0_i32_0 : i32, i32, i32
  }
  func.func @transform_3(%arg0: i32, %arg1: i32) -> (i32, i32, i32) {
    %c0_i32 = arith.constant 0 : i32
    %c0_i32_0 = arith.constant 0 : i32
    %c0_i32_1 = arith.constant 0 : i32
    return %arg0, %c0_i32, %c0_i32_0 : i32, i32, i32
  }
}

</mosaic_0001>

<bundles_post_ra>
// kernel: gatedcnn_encoder.1
= control target key start
LH: loop header
LB: loop body
LE: loop exit
PB: predicated region body
PF: predicated region fallthrough
CT: control target
= control target key end

     0   :  { %s990_s12 = smov 0   ;;  %s992_s13 = smov 0   ;;  %s1192_s0 = inlined_call_operand.vmem [shape: f32[4,8,128], index: 0, kind: input, shape index: {}]   ;;  %s1193_s1 = inlined_call_operand.vmem [shape: f32[3,3,128,256], index: 1, kind: input, shape index: {}]   ;;  %s1194_s2 = inlined_call_operand.vmem [shape: f32[3,1,256], index: 2, kind: input, shape index: {}]   ;;  %s1195_s3 = inlined_call_operand.vmem [shape: f32[4,8,128], index: 3, kind: output, shape index: {}]  }
   0x1   :  { %s994_s14 = smov 0   ;;  %s996_s15 = smov 0  }
   0x2   :  { %s998_s16 = smov 0  }
   0x3 LB: > { %s22_s17 = sadd.s32 1, %s958_s14  ;;  %s25_s18 = sadd.s32 1, %s962_s15  ;;  %s966_s16 = sphi %s998_s16, %s13_s16   ;;  %s962_s15 = sphi %s996_s15, %s1201_s15   ;;  %s958_s14 = sphi %s994_s14, %s1200_s14   ;;  %s954_s13 = sphi %s992_s13, %s1199_s13   ;;  %s950_s12 = sphi %s990_s12, %s1198_s12  }
   0x4   : > { %p23_p0 = scmp.ge.s32.totalorder %s22_s17, 3  ;;  %p763_p1 = scmp.ge.s32.totalorder %s966_s16, 1 }
   0x5   : > { %p169_p2 = scmp.lt.s32.totalorder %s966_s16, 7 }
   0x6   : > { %s1203_s17 = smov (%p23_p0, %s22_s17), 0  ;;  %s1205_s18 = smov (!%p23_p0, %s25_s18), %s962_s15 }
   0x7   : > { %p170_p3 = pnand %p763_p1, %p169_p2  ;;  %p27_p4 = scmp.ge.s32.totalorder %s1205_s18, 2 }
   0x8   : > { %s764_s19 = sshll.u32 (!%p170_p3), %s954_s13, 1  ;;  %p208_p5 = scmp.lt.s32.totalorder (!%p170_p3), %s950_s12, 2 }
   0x9   : > { %s1207_s18 = smov (%p27_p4, %s1205_s18), 0  ;;  %173 = sbr.rel (%p170_p3) target bundleno = 353 (0x161), region = 32 }
   0xa   : > { %p203_p6 = scmp.lt.s32.totalorder (!%p170_p3), %s764_s19, 3  ;;  %p223_p7 = scmp.eq.s32.totalorder (!%p170_p3), %s950_s12, 0 }
   0xb   : > { %p770_p8 = scmp.ne.s32.totalorder (!%p170_p3), %s950_s12, 0 }
   0xe   : > { %s209_s20 = scalar_select %p208_p5, %s950_s12, 2 }
   0xf   : > { %s1209_s19 = smov (!%p203_p6, %s764_s19), 3  ;;  %226 = sbr.rel (%p770_p8) target bundleno = 23 (0x17), region = 36 }
  0x10   : > { %s877_s21 = smul.u32 768, %s209_s20  ;;  %s767_s22 = sshll.u32 %s209_s20, 1 }
  0x11   : > { %s765_s23 = sshll.u32 %s1209_s19, 3  ;;  %s1028_s26 = scalar_lea.vmem %s1194_s2, %s767_s22 }
  0x12   : > { %s206_s29 = scalar_lea.vmem %s1192_s0, %s765_s23  ;;  %s1036_s5 = scalar_lea.vmem %s1193_s1, %s877_s21 }
  0x13   : > { %s1041_s8 = scalar_lea.vmem %s1195_s3, %s765_s23 }
  0x14   : > { %v231_v0 = vld [vmem:[%s206_s29] sm:$0xff]  ;;  %v771_v1 = vld [vmem:[%s206_s29 + $0x8] sm:$0xff]  ;;  %v968_v2 = vmov 0.0  }
  0x15   : > { %227 = vst [vmem:[#allocation2] sm:$0xff] %v968_v2  ;;  %229 = vst [vmem:[#allocation2 + $0x10] sm:$0xff] %v968_v2 }
  0x16   : > { %232 = vst [vmem:[#allocation2 + $0x8] sm:$0xff] %v231_v0  ;;  %235 = vst [vmem:[#allocation2 + $0x18] sm:$0xff] %v771_v1 }
  0x17 PF: > { %v803_v3 = vld [vmem:[%s1036_s5 + $0x1f8] sm:$0xff]  ;;  %v802_v5 = vld [vmem:[%s1036_s5 + $0x1f0] sm:$0xff]  ;;  %v801_v7 = vld [vmem:[%s1036_s5 + $0x1e8] sm:$0xff]  ;;  %s622_s9 = ssub.s32 0, %s950_s12  ;;  %p621_p9 = scmp.lt.s32.totalorder %s950_s12, 0 }
  0x18   : > { %v270_v4 = vld [vmem:[%s1036_s5 + $0xf8] sm:$0xff]  ;;  %307 = vmatprep.subr.mxu0 %v803_v3  ;;  %v269_v6 = vld [vmem:[%s1036_s5 + $0xf0] sm:$0xff]  ;;  %v268_v8 = vld [vmem:[%s1036_s5 + $0xe8] sm:$0xff]  ;;  %s836_s10 = smin.u32 %s950_s12, %s622_s9  ;;  %p620_p11 = scmp.gt.s32.totalorder %s950_s12, 0 }
  0x19   : > { %388 = vmatprep.subr.mxu1 %v270_v4  ;;  %308 = vmatpush1.msra.mxu0 %v802_v5  ;;  %v800_v9 = vld [vmem:[%s1036_s5 + $0x1e0] sm:$0xff]  ;;  %v799_v11 = vld [vmem:[%s1036_s5 + $0x1d8] sm:$0xff]  ;;  %v798_v13 = vld [vmem:[%s1036_s5 + $0x1d0] sm:$0xff]  ;;  %v969_v5 = vmov 0.0   ;;  %s624_s11 = sand.u32 1, %s836_s10  }
  0x1a   : > { %389 = vmatpush1.msra.mxu1 %v269_v6  ;;  %v267_v10 = vld [vmem:[%s1036_s5 + $0xe0] sm:$0xff]  ;;  %309 = vmatprep.subr.mxu0 %v801_v7  ;;  %v266_v12 = vld [vmem:[%s1036_s5 + $0xd8] sm:$0xff]  ;;  %v265_v14 = vld [vmem:[%s1036_s5 + $0xd0] sm:$0xff]  ;;  %s625_s13 = ssub.s32 0, %s624_s11 }
  0x1b   : > { %390 = vmatprep.subr.mxu1 %v268_v8  ;;  %310 = vmatpush1.msra.mxu0 %v800_v9  ;;  %v797_v15 = vld [vmem:[%s1036_s5 + $0x1c8] sm:$0xff]  ;;  %v796_v17 = vld [vmem:[%s1036_s5 + $0x1c0] sm:$0xff]  ;;  %v795_v19 = vld [vmem:[%s1036_s5 + $0x1b8] sm:$0xff]  ;;  %s1211_s13 = smov (!%p621_p9, %s625_s13), %s624_s11 }
  0x1c   : > { %391 = vmatpush1.msra.mxu1 %v267_v10  ;;  %v264_v16 = vld [vmem:[%s1036_s5 + $0xc8] sm:$0xff]  ;;  %311 = vmatprep.subr.mxu0 %v799_v11  ;;  %v263_v18 = vld [vmem:[%s1036_s5 + $0xc0] sm:$0xff]  ;;  %v262_v20 = vld [vmem:[%s1036_s5 + $0xb8] sm:$0xff]  ;;  %p838_p10 = scmp.lt.s32.totalorder %s1211_s13, 0  ;;  %s631_s19 = sadd.s32 2, %s1211_s13 }
  0x1d   : > { %392 = vmatprep.subr.mxu1 %v266_v12  ;;  %312 = vmatpush1.msra.mxu0 %v798_v13  ;;  %v794_v21 = vld [vmem:[%s1036_s5 + $0x1b0] sm:$0xff]  ;;  %v793_v23 = vld [vmem:[%s1036_s5 + $0x1a8] sm:$0xff]  ;;  %v792_v25 = vld [vmem:[%s1036_s5 + $0x1a0] sm:$0xff] }
  0x1e   : > { %393 = vmatpush1.msra.mxu1 %v265_v14  ;;  %313 = vmatprep.subr.mxu0 %v797_v15  ;;  %v261_v22 = vld [vmem:[%s1036_s5 + $0xb0] sm:$0xff]  ;;  %v260_v24 = vld [vmem:[%s1036_s5 + $0xa8] sm:$0xff]  ;;  %v259_v26 = vld [vmem:[%s1036_s5 + $0xa0] sm:$0xff]  ;;  %s1213_s19 = smov (!%p838_p10, %s631_s19), %s1211_s13 }
  0x1f   : > { %394 = vmatprep.subr.mxu1 %v264_v16  ;;  %314 = vmatpush1.msra.mxu0 %v796_v17  ;;  %v791_v27 = vld [vmem:[%s1036_s5 + $0x198] sm:$0xff]  ;;  %v790_v29 = vld [vmem:[%s1036_s5 + $0x190] sm:$0xff]  ;;  %v789_v31 = vld [vmem:[%s1036_s5 + $0x188] sm:$0xff]  ;;  %p633_p12 = scmp.eq.s32.totalorder %s1213_s19, 0 }
  0x20   : > { %395 = vmatpush1.msra.mxu1 %v263_v18  ;;  %315 = vmatprep.subr.mxu0 %v795_v19  ;;  %v258_v28 = vld [vmem:[%s1036_s5 + $0x98] sm:$0xff]  ;;  %v257_v30 = vld [vmem:[%s1036_s5 + $0x90] sm:$0xff]  ;;  %v256_v32 = vld [vmem:[%s1036_s5 + $0x88] sm:$0xff] }
  0x21   : > { %396 = vmatprep.subr.mxu1 %v262_v20  ;;  %316 = vmatpush1.msra.mxu0 %v794_v21  ;;  %v788_v33 = vld [vmem:[%s1036_s5 + $0x180] sm:$0xff]  ;;  %v787_v35 = vld [vmem:[%s1036_s5 + $0x178] sm:$0xff]  ;;  %v786_v37 = vld [vmem:[%s1036_s5 + $0x170] sm:$0xff]  ;;  %p1153_p13 = pnand %p633_p12, %p620_p11 }
  0x22   : > { %397 = vmatpush1.msra.mxu1 %v261_v22  ;;  %317 = vmatprep.subr.mxu0 %v793_v23  ;;  %v255_v34 = vld [vmem:[%s1036_s5 + $0x80] sm:$0xff]  ;;  %v254_v36 = vld [vmem:[%s1036_s5 + $0x78] sm:$0xff]  ;;  %v253_v38 = vld [vmem:[%s1036_s5 + $0x70] sm:$0xff] }
  0x23   : > { %398 = vmatprep.subr.mxu1 %v260_v24  ;;  %318 = vmatpush1.msra.mxu0 %v792_v25  ;;  %v785_v39 = vld [vmem:[%s1036_s5 + $0x168] sm:$0xff]  ;;  %v784_v41 = vld [vmem:[%s1036_s5 + $0x160] sm:$0xff]  ;;  %v783_v43 = vld [vmem:[%s1036_s5 + $0x158] sm:$0xff]  ;;  %p635_p0 = pneg %p1153_p13 }
  0x24   : > { %399 = vmatpush1.msra.mxu1 %v259_v26  ;;  %319 = vmatprep.subr.mxu0 %v791_v27  ;;  %v252_v40 = vld [vmem:[%s1036_s5 + $0x68] sm:$0xff]  ;;  %v251_v42 = vld [vmem:[%s1036_s5 + $0x60] sm:$0xff]  ;;  %v250_v44 = vld [vmem:[%s1036_s5 + $0x58] sm:$0xff]  ;;  %s839_s22 = scalar_select %p1153_p13, 0, 1 }
  0x25   : > { %400 = vmatprep.subr.mxu1 %v258_v28  ;;  %320 = vmatpush1.msra.mxu0 %v790_v29  ;;  %v782_v45 = vld [vmem:[%s1036_s5 + $0x150] sm:$0xff]  ;;  %v781_v47 = vld [vmem:[%s1036_s5 + $0x148] sm:$0xff]  ;;  %v780_v49 = vld [vmem:[%s1036_s5 + $0x140] sm:$0xff]  ;;  %p1161_p1 = por %p635_p0, %p223_p7 }
  0x26   : > { %401 = vmatpush1.msra.mxu1 %v257_v30  ;;  %321 = vmatprep.subr.mxu0 %v789_v31  ;;  %v249_v46 = vld [vmem:[%s1036_s5 + $0x50] sm:$0xff]  ;;  %v248_v48 = vld [vmem:[%s1036_s5 + $0x48] sm:$0xff]  ;;  %v247_v50 = vld [vmem:[%s1036_s5 + $0x40] sm:$0xff] }
  0x27   : > { %402 = vmatprep.subr.mxu1 %v256_v32  ;;  %322 = vmatpush1.msra.mxu0 %v788_v33  ;;  %v779_v51 = vld [vmem:[%s1036_s5 + $0x138] sm:$0xff]  ;;  %v778_v53 = vld [vmem:[%s1036_s5 + $0x130] sm:$0xff]  ;;  %v777_v55 = vld [vmem:[%s1036_s5 + $0x128] sm:$0xff] }
  0x28   : > { %403 = vmatpush1.msra.mxu1 %v255_v34  ;;  %323 = vmatprep.subr.mxu0 %v787_v35  ;;  %v246_v52 = vld [vmem:[%s1036_s5 + $0x38] sm:$0xff]  ;;  %v245_v54 = vld [vmem:[%s1036_s5 + $0x30] sm:$0xff]  ;;  %v244_v56 = vld [vmem:[%s1036_s5 + $0x28] sm:$0xff] }
  0x29   : > { %404 = vmatprep.subr.mxu1 %v254_v36  ;;  %324 = vmatpush1.msra.mxu0 %v786_v37  ;;  %v776_v57 = vld [vmem:[%s1036_s5 + $0x120] sm:$0xff]  ;;  %v775_v59 = vld [vmem:[%s1036_s5 + $0x118] sm:$0xff]  ;;  %v774_v61 = vld [vmem:[%s1036_s5 + $0x110] sm:$0xff] }
  0x2a   : > { %405 = vmatpush1.msra.mxu1 %v253_v38  ;;  %325 = vmatprep.subr.mxu0 %v785_v39  ;;  %v243_v58 = vld [vmem:[%s1036_s5 + $0x20] sm:$0xff]  ;;  %v242_v60 = vld [vmem:[%s1036_s5 + $0x18] sm:$0xff]  ;;  %v241_v62 = vld [vmem:[%s1036_s5 + $0x10] sm:$0xff] }
  0x2b   : > { %406 = vmatprep.subr.mxu1 %v252_v40  ;;  %326 = vmatpush1.msra.mxu0 %v784_v41  ;;  %v773_v63 = vld [vmem:[%s1036_s5 + $0x108] sm:$0xff]  ;;  %v772_v1 = vld [vmem:[%s1036_s5 + $0x100] sm:$0xff]  ;;  %v835_v6 = vld [vmem:[%s1036_s5 + $0x2f8] sm:$0xff] }
  0x2c   : > { %407 = vmatpush1.msra.mxu1 %v251_v42  ;;  %327 = vmatprep.subr.mxu0 %v783_v43  ;;  %v240_v0 = vld [vmem:[%s1036_s5 + $0x8] sm:$0xff]  ;;  %v239_v2 = vld [vmem:[%s1036_s5] sm:$0xff]  ;;  %v834_v7 = vld [vmem:[%s1036_s5 + $0x2f0] sm:$0xff] }
  0x2d   : > { %408 = vmatprep.subr.mxu1 %v250_v44  ;;  %328 = vmatpush1.msra.mxu0 %v782_v45  ;;  %v271_v3 = vld [vmem:[#allocation2 + $0x7] sm:$0xff]  ;;  %v831_v10 = vld [vmem:[%s1036_s5 + $0x2d8] sm:$0xff]  ;;  %v830_v11 = vld [vmem:[%s1036_s5 + $0x2d0] sm:$0xff] }
  0x2e   : > { %409 = vmatpush1.msra.mxu1 %v249_v46  ;;  %329 = vmatprep.subr.mxu0 %v781_v47  ;;  %v236_v4 = vld [vmem:[#allocation2 + $0x6] sm:$0xff]  ;;  %v827_v14 = vld [vmem:[%s1036_s5 + $0x2b8] sm:$0xff]  ;;  %v826_v15 = vld [vmem:[%s1036_s5 + $0x2b0] sm:$0xff] }
  0x2f   : > { %410 = vmatprep.subr.mxu1 %v248_v48  ;;  %330 = vmatpush1.msra.mxu0 %v780_v49  ;;  %v833_v8 = vld [vmem:[%s1036_s5 + $0x2e8] sm:$0xff]  ;;  %v832_v9 = vld [vmem:[%s1036_s5 + $0x2e0] sm:$0xff]  ;;  %v823_v18 = vld [vmem:[%s1036_s5 + $0x298] sm:$0xff] }
  0x30   : > { %411 = vmatpush1.msra.mxu1 %v247_v50  ;;  %331 = vmatprep.subr.mxu0 %v779_v51  ;;  %v829_v12 = vld [vmem:[%s1036_s5 + $0x2c8] sm:$0xff]  ;;  %v828_v13 = vld [vmem:[%s1036_s5 + $0x2c0] sm:$0xff]  ;;  %v822_v19 = vld [vmem:[%s1036_s5 + $0x290] sm:$0xff] }
  0x31   : > { %412 = vmatprep.subr.mxu1 %v246_v52  ;;  %332 = vmatpush1.msra.mxu0 %v778_v53  ;;  %v825_v16 = vld [vmem:[%s1036_s5 + $0x2a8] sm:$0xff]  ;;  %v824_v17 = vld [vmem:[%s1036_s5 + $0x2a0] sm:$0xff]  ;;  %v819_v22 = vld [vmem:[%s1036_s5 + $0x278] sm:$0xff]  ;;  %v592_v53 = vlaneseq }
  0x32   : > { %413 = vmatpush1.msra.mxu1 %v245_v54  ;;  %333 = vmatprep.subr.mxu0 %v777_v55  ;;  %v821_v20 = vld [vmem:[%s1036_s5 + $0x288] sm:$0xff]  ;;  %v820_v21 = vld [vmem:[%s1036_s5 + $0x280] sm:$0xff]  ;;  %v818_v23 = vld [vmem:[%s1036_s5 + $0x270] sm:$0xff] }
  0x33   : > { %414 = vmatprep.subr.mxu1 %v244_v56  ;;  %334 = vmatpush1.msra.mxu0 %v776_v57  ;;  %v817_v24 = vld [vmem:[%s1036_s5 + $0x268] sm:$0xff]  ;;  %v816_v25 = vld [vmem:[%s1036_s5 + $0x260] sm:$0xff]  ;;  %v815_v26 = vld [vmem:[%s1036_s5 + $0x258] sm:$0xff]  ;;  %v593_v56 = vshrl.u32 %v592_v53, 7 }
  0x34   : > { %415 = vmatpush1.msra.mxu1 %v243_v58  ;;  %335 = vmatprep.subr.mxu0 %v775_v59  ;;  %v814_v27 = vld [vmem:[%s1036_s5 + $0x250] sm:$0xff]  ;;  %v813_v30 = vld [vmem:[%s1036_s5 + $0x248] sm:$0xff]  ;;  %v812_v31 = vld [vmem:[%s1036_s5 + $0x240] sm:$0xff] }
  0x35   : > { %416 = vmatprep.subr.mxu1 %v242_v60  ;;  %336 = vmatpush1.msra.mxu0 %v774_v61  ;;  %v272_v28 = vld [vmem:[#allocation2 + $0xf] sm:$0xff]  ;;  %v811_v32 = vld [vmem:[%s1036_s5 + $0x238] sm:$0xff]  ;;  %v808_v37 = vld [vmem:[%s1036_s5 + $0x220] sm:$0xff]  ;;  %v598_v57 = vsub.s32 1, %v593_v56 }
  0x36   : > { %417 = vmatpush1.msra.mxu1 %v241_v62  ;;  %337 = vmatprep.subr.mxu0 %v773_v63  ;;  %v237_v29 = vld [vmem:[#allocation2 + $0xe] sm:$0xff]  ;;  %v273_v34 = vld [vmem:[#allocation2 + $0x17] sm:$0xff]  ;;  %v804_v41 = vld [vmem:[%s1036_s5 + $0x200] sm:$0xff] }
  0x37   : > { %418 = vmatprep.subr.mxu1 %v240_v0  ;;  %338 = vmatpush1.msra.mxu0 %v772_v1  ;;  %v810_v33 = vld [vmem:[%s1036_s5 + $0x230] sm:$0xff]  ;;  %v809_v36 = vld [vmem:[%s1036_s5 + $0x228] sm:$0xff]  ;;  %v807_v38 = vld [vmem:[%s1036_s5 + $0x218] sm:$0xff] }
  0x38   : > { %371 = vmatprep.mubr.f32.mxu0 %v969_v5  ;;  %419 = vmatpush1.msra.mxu1 %v239_v2  ;;  %v238_v35 = vld [vmem:[#allocation2 + $0x16] sm:$0xff]  ;;  %v805_v40 = vld [vmem:[%s1036_s5 + $0x208] sm:$0xff]  ;;  %v590_v61 = vld [vmem:[%s1028_s26] sm:$0x3] }
  0x39   : > { %452 = vmatprep.mubr.f32.mxu1 %v969_v5  ;;  %372 = vmatmul.mubr.f32.vlgmr.msra.gmra.mxu0 %v271_v3  ;;  %v806_v39 = vld [vmem:[%s1036_s5 + $0x210] sm:$0xff]  ;;  %v469_v42 = vld [vmem:[#allocation2 + $0x8] sm:$0xff]  ;;  %v471_v44 = vld [vmem:[#allocation2 + $0x18] sm:$0xff]  ;;  %v599_v0 = vrot.slane %v590_v61, %v598_v57 }
  0x3a   : > { %453 = vmatmul.mubr.f32.vlgmr.msra.gmra.mxu1 %v236_v4  ;;  %505 = vmatprep.subr.mxu0 %v835_v6  ;;  %v470_v43 = vld [vmem:[#allocation2 + $0x10] sm:$0xff] }
  0x3b   : > { %845 = vmatprep.subr.mxu1 %v835_v6  ;;  %506 = vmatpush1.msra.mxu0 %v834_v7 }
  0x3c   : > { %861 = vmatpush1.msra.mxu1 %v834_v7  ;;  %507 = vmatprep.subr.mxu0 %v833_v8 }
  0x3d   : > { %846 = vmatprep.subr.mxu1 %v833_v8  ;;  %508 = vmatpush1.msra.mxu0 %v832_v9 }
  0x3e   : > { %862 = vmatpush1.msra.mxu1 %v832_v9  ;;  %509 = vmatprep.subr.mxu0 %v831_v10 }
  0x3f   : > { %847 = vmatprep.subr.mxu1 %v831_v10  ;;  %510 = vmatpush1.msra.mxu0 %v830_v11 }
  0x40   : > { %863 = vmatpush1.msra.mxu1 %v830_v11  ;;  %511 = vmatprep.subr.mxu0 %v829_v12 }
  0x41   : > { %848 = vmatprep.subr.mxu1 %v829_v12  ;;  %512 = vmatpush1.msra.mxu0 %v828_v13 }
  0x42   : > { %864 = vmatpush1.msra.mxu1 %v828_v13  ;;  %513 = vmatprep.subr.mxu0 %v827_v14 }
  0x43   : > { %849 = vmatprep.subr.mxu1 %v827_v14  ;;  %514 = vmatpush1.msra.mxu0 %v826_v15 }
  0x44   : > { %865 = vmatpush1.msra.mxu1 %v826_v15  ;;  %515 = vmatprep.subr.mxu0 %v825_v16 }
  0x45   : > { %850 = vmatprep.subr.mxu1 %v825_v16  ;;  %516 = vmatpush1.msra.mxu0 %v824_v17 }
  0x46   : > { %866 = vmatpush1.msra.mxu1 %v824_v17  ;;  %517 = vmatprep.subr.mxu0 %v823_v18 }
  0x47   : > { %851 = vmatprep.subr.mxu1 %v823_v18  ;;  %518 = vmatpush1.msra.mxu0 %v822_v19  ;;  %v594_v18 = vsub.s32 0, %v593_v56 }
  0x48   : > { %867 = vmatpush1.msra.mxu1 %v822_v19  ;;  %519 = vmatprep.subr.mxu0 %v821_v20 }
  0x49   : > { %852 = vmatprep.subr.mxu1 %v821_v20  ;;  %520 = vmatpush1.msra.mxu0 %v820_v21 }
  0x4a   : > { %868 = vmatpush1.msra.mxu1 %v820_v21  ;;  %521 = vmatprep.subr.mxu0 %v819_v22  ;;  %v595_v21 = vrot.slane %v590_v61, %v594_v18 }
  0x4b   : > { %853 = vmatprep.subr.mxu1 %v819_v22  ;;  %522 = vmatpush1.msra.mxu0 %v818_v23 }
  0x4c   : > { %869 = vmatpush1.msra.mxu1 %v818_v23  ;;  %523 = vmatprep.subr.mxu0 %v817_v24 }
  0x4d   : > { %854 = vmatprep.subr.mxu1 %v817_v24  ;;  %524 = vmatpush1.msra.mxu0 %v816_v25  ;;  %v639_v24 = vstv %s839_s22 }
  0x4e   : > { %870 = vmatpush1.msra.mxu1 %v816_v25  ;;  %525 = vmatprep.subr.mxu0 %v815_v26  ;;  %vm640_vm0 = vcmp.eq.s32.totalorder %v639_v24, 1 }
  0x4f   : > { %855 = vmatprep.subr.mxu1 %v815_v26  ;;  %377 = vmatprep.mubr.f32.mxu0 %v969_v5 }
  0x50   : > { %458 = vmatprep.mubr.f32.mxu1 %v969_v5  ;;  %526 = vmatpush1.msra.mxu0 %v814_v27 }
  0x51   : > { %871 = vmatpush1.msra.mxu1 %v814_v27  ;;  %378 = vmatmul.mubr.f32.gmra.mxu0 %v272_v28  ;;  %v636_v27 = vld [vmem:[#allocation3] sm:$0xff] }
  0x52   : > { %459 = vmatmul.mubr.f32.gmra.mxu1 %v237_v29  ;;  %527 = vmatprep.subr.mxu0 %v813_v30 }
  0x53   : > { %856 = vmatprep.subr.mxu1 %v813_v30  ;;  %528 = vmatpush1.msra.mxu0 %v812_v31 }
  0x54   : > { %872 = vmatpush1.msra.mxu1 %v812_v31  ;;  %529 = vmatprep.subr.mxu0 %v811_v32 }
  0x55   : > { %857 = vmatprep.subr.mxu1 %v811_v32  ;;  %381 = vmatprep.mubr.f32.mxu0 %v969_v5 }
  0x56   : > { %462 = vmatprep.mubr.f32.mxu1 %v969_v5  ;;  %530 = vmatpush1.msra.mxu0 %v810_v33 }
  0x57   : > { %873 = vmatpush1.msra.mxu1 %v810_v33  ;;  %382 = vmatmul.mubr.f32.gmra.mxu0 %v273_v34 }
  0x58   : > { %463 = vmatmul.mubr.f32.gmra.mxu1 %v238_v35  ;;  %531 = vmatprep.subr.mxu0 %v809_v36 }
  0x59   : > { %858 = vmatprep.subr.mxu1 %v809_v36  ;;  %532 = vmatpush1.msra.mxu0 %v808_v37 }
  0x5a   : > { %874 = vmatpush1.msra.mxu1 %v808_v37  ;;  %533 = vmatprep.subr.mxu0 %v807_v38 }
  0x5b   : > { %859 = vmatprep.subr.mxu1 %v807_v38  ;;  %534 = vmatpush1.msra.mxu0 %v806_v39 }
  0x5c   : > { %875 = vmatpush1.msra.mxu1 %v806_v39  ;;  %535 = vmatprep.subr.mxu0 %v805_v40 }
  0x5d   : > { %860 = vmatprep.subr.mxu1 %v805_v40  ;;  %536 = vmatpush1.msra.mxu0 %v804_v41 }
  0x5e   : > { %876 = vmatpush1.msra.mxu1 %v804_v41  ;;  %569 = vmatprep.mubr.f32.mxu0 %v969_v5 }
  0x5f   : > { %575 = vmatprep.mubr.f32.mxu1 %v969_v5  ;;  %570 = vmatmul.mubr.f32.vlgmr.msra.gmra.mxu0 %v469_v42 }
  0x60   : > { %576 = vmatmul.mubr.f32.vlgmr.msra.gmra.mxu1 %v470_v43 }
  0x61   : > { %579 = vmatprep.mubr.f32.mxu1 %v969_v5 }
  0x64   : > { %580 = vmatmul.mubr.f32.gmra.mxu1 %v471_v44 }
  0xf9   : > { %v373_v45 = vpop.f32.mrf.mxu0 }
  0xfa   : > { %v454_v46 = vpop.f32.mrf.mxu1 }
  0xfb   : > { %v375_v47 = vpop.f32.mrf.mxu0  ;;  %v455_v19 = vadd.f32 %v454_v46, %v373_v45 }
  0xfc   : > { %v456_v48 = vpop.f32.mrf.mxu1 }
  0xfd   : > { %v457_v63 = vadd.f32 %v456_v48, %v375_v47 }
 0x111   : > { %v379_v49 = vpop.f32.mrf.mxu0 }
 0x112   : > { %v460_v50 = vpop.f32.mrf.mxu1 }
 0x113   : > { %v380_v51 = vpop.f32.mrf.mxu0 }
 0x114   : > { %v461_v52 = vpop.f32.mrf.mxu1 }
 0x117   : > { %v383_v54 = vpop.f32.mrf.mxu0 }
 0x118   : > { %v464_v55 = vpop.f32.mrf.mxu1 }
 0x119   : > { %v385_v58 = vpop.f32.mrf.mxu0  ;;  %v465_v22 = vadd.f32 %v464_v55, %v383_v54 }
 0x11a   : > { %v466_v59 = vpop.f32.mrf.mxu1 }
 0x11b   : > { %v467_v5 = vadd.f32 %v466_v59, %v385_v58 }
 0x11f   : > { %v571_v60 = vpop.f32.mrf.mxu0 }
 0x120   : > { %v577_v62 = vpop.f32.mrf.mxu1  ;;  %v586_v20 = vadd.f32 %v571_v60, %v455_v19 }
 0x121   : > { %v573_v1 = vpop.f32.mrf.mxu0 }
 0x122   : > { %v578_v2 = vpop.f32.mrf.mxu1  ;;  %v587_v3 = vadd.f32 %v573_v1, %v457_v63  ;;  %v602_v23 = vadd.f32 %v595_v21, %v586_v20 }
 0x124   : > { %v581_v4 = vpop.f32.mrf.mxu1  ;;  %v603_v6 = vadd.f32 %v599_v0, %v587_v3 }
 0x125   : > { %v588_v25 = vadd.f32 %v581_v4, %v465_v22 }
 0x126   : > { %v583_v7 = vpop.f32.mrf.mxu1  ;;  %v606_v8 = vsub.f32 0.0, %v603_v6 }
 0x127   : > { %v589_v9 = vadd.f32 %v583_v7, %v467_v5  ;;  %v604_v30 = vadd.f32 %v595_v21, %v588_v25 }
 0x128   : > { %v608_v10 = vmul.f32 1.442695, %v606_v8 }
 0x129   : > { %v605_v11 = vadd.f32 %v599_v0, %v589_v9 }
 0x12a   : > { %920 = vpow2.f32 %v608_v10 }
 0x12b   : > { %v607_v12 = vsub.f32 0.0, %v605_v11 }
 0x12d   : > { %v610_v13 = vmul.f32 1.442695, %v607_v12 }
 0x12f   : > { %922 = vpow2.f32 %v610_v13 }
 0x137   : > { %v921_v14 = vpop.eup %920 }
 0x138   : > { %v612_v15 = vadd.f32 1.0, %v921_v14 }
 0x13a   : > { %924 = vrcp.f32 %v612_v15 }
 0x13c   : > { %v923_v16 = vpop.eup %922 }
 0x13d   : > { %v613_v17 = vadd.f32 1.0, %v923_v16 }
 0x13f   : > { %926 = vrcp.f32 %v613_v17 }
 0x147   : > { %v925_v26 = vpop.eup %924 }
 0x148   : > { %v618_v28 = vmul.f32 %v925_v26, %v602_v23 }
 0x149   : > { %645 = sbr.rel (!%p1161_p1) target bundleno = 334 (0x14e), region = 40 }
 0x14a   : > { %v637_v29 = vadd.f32 %v636_v27, %v618_v28 }
 0x14c   : > { %v927_v31 = vpop.eup %926  ;;  %v641_v32 = vsel %vm640_vm0, %v637_v29, %v618_v28 }
 0x14d   : > { %v619_v33 = vmul.f32 %v927_v31, %v604_v30  ;;  %646 = vst [vmem:[#allocation3] sm:$0xff] (%p1161_p1), %v641_v32 }
 0x14e PF: > { %647 = vst [vmem:[#allocation2 + $0x8] sm:$0xff] %v641_v32  ;;  %p840_p2 = scmp.ne.s32.totalorder %s950_s12, 2 }
 0x150   : > { %651 = sbr.rel (%p840_p2) target bundleno = 342 (0x156), region = 44 }
 0x155   : > { %652 = vst [vmem:[%s1041_s8] sm:$0xff] %v641_v32 }
 0x156 PF: > { %v654_v34 = vld [vmem:[#allocation3 + $0x8] sm:$0xff]  ;;  %659 = sbr.rel (!%p1161_p1) target bundleno = 347 (0x15b), region = 48 }
 0x157   : > { %v655_v35 = vadd.f32 %v654_v34, %v619_v33 }
 0x159   : > { %v656_v36 = vsel %vm640_vm0, %v655_v35, %v619_v33 }
 0x15a   : > { %660 = vst [vmem:[#allocation3 + $0x8] sm:$0xff] (%p1161_p1), %v656_v36 }
 0x15b PF: > { %661 = vst [vmem:[#allocation2 + $0x18] sm:$0xff] %v656_v36  ;;  %664 = sbr.rel (%p840_p2) target bundleno = 353 (0x161), region = 52 }
 0x160   : > { %842 = vst [vmem:[%s1041_s8 + $0x8] sm:$0xff] %v656_v36 }
 0x161 PF: > { %s13_s16 = sadd.s32 1, %s966_s16   ;;  %s1198_s12 = smov %s958_s14 }
 0x162   : > { %p10_p3 = scmp.ge.s32.totalorder %s13_s16, 8   ;;  %s1199_s13 = smov %s962_s15 }
 0x163   : > { %s1200_s14 = smov %s1203_s17  ;;  %s1201_s15 = smov %s1207_s18 }
 0x164   :  { %12 = sbr.rel (!%p10_p3) target bundleno = 3 (0x3), region = 93 }

</bundles_post_ra>
